<compile_context>
chip_gen: v6e
topology: v6e:2x2x1
jax: 0.10.0
libtpu: 0.0.40
codegen_flags: <defaults>
</compile_context>

<pallas_src>
import functools
import math

import jax
import jax.numpy as jnp
from jax.experimental import pallas as pl
from jax.experimental.pallas import tpu as pltpu


# ---------------------------------------------------------------------------
# VMEM budgeting helpers
# ---------------------------------------------------------------------------
def _vmem_capacity_bytes():
    try:
        return int(getattr(pltpu.get_tpu_info(), "vmem_capacity_bytes",
                           64 * 2**20))
    except Exception:
        return 64 * 2**20            # conservative (v7x per-TC) fallback


def _vmem_limit_bytes(requested):
    cap = _vmem_capacity_bytes()
    hi = max(16 * 2**20, cap - 8 * 2**20)     # leave compiler/semaphore headroom
    return int(min(max(16 * 2**20, requested), hi))


def _block_vmem_estimate(tq, S, D, heads, F):
    """Rough working set of one fused_block_kernel grid step (bytes)."""
    w = 2 * (2 * D * D + 3 * D * F)            # bf16 weights (single-buffered)
    kv = 2 * 2 * (2 * S * D)                   # bf16 K^T + V, double-buffered
    io = 4 * 2 * (2 * tq * D)                  # f32 xq in + out, double-buffered
    sc = 4 * 2 * heads * tq * S                # f32 scores + probs
    ffn = 4 * (2 * tq * 2 * F + 2 * tq * D)    # f32 g1|g3 + ctx/attn temporaries
    return w + kv + io + sc + ffn + 4 * 4 * S


# ---------------------------------------------------------------------------
# Single-buffering of constant-index operands (pl.Buffered(1)) with fallback.
# ---------------------------------------------------------------------------
_SINGLE_BUFFER = [True]


def _const_spec(shape, index_map, single_buffer):
    if single_buffer:
        # Constant index_map -> one VMEM copy is enough; double buffering would
        # only waste VMEM (matters most on v7x's 64 MiB per TensorCore).
        return pl.BlockSpec(shape, index_map, pipeline_mode=pl.Buffered(1))
    return pl.BlockSpec(shape, index_map)


def _call_with_fallback(builder):
    """Try single-buffered constant operands; fall back to double buffering."""
    if _SINGLE_BUFFER[0]:
        try:
            return builder(True)
        except Exception:
            _SINGLE_BUFFER[0] = False
    return builder(False)


# ---------------------------------------------------------------------------
# Kernel 1: per-batch-element bf16 KV cache (K pre-transposed to (heads,hd,S)).
# ---------------------------------------------------------------------------
def kv_build_kernel(x_ref, cos_ref, sin_ref, wkv_ref, anw_ref,
                    kt_ref, v_ref, *, heads, eps):
    S, D = x_ref.shape[1], x_ref.shape[2]
    hd = D // heads
    half = hd // 2

    x = x_ref[0]                                               # (S, D) f32
    var = jnp.mean(x * x, axis=-1, keepdims=True)
    xn = ((x * jax.lax.rsqrt(var + eps)) * anw_ref[...]).astype(jnp.bfloat16)
    kv = jnp.dot(xn, wkv_ref[...],
                 preferred_element_type=jnp.float32)           # (S, 2D) f32

    def split_heads(t2d):                                      # -> (heads, S, hd)
        return jnp.stack(
            [t2d[:, h * hd:(h + 1) * hd] for h in range(heads)], axis=0)

    k3 = split_heads(kv[:, :D])
    v3 = split_heads(kv[:, D:])
    cos = cos_ref[...][None]                                   # (1, S, hd)
    sin = sin_ref[...][None]
    rot = jnp.concatenate([-k3[..., half:], k3[..., :half]], axis=-1)
    k3 = k3 * cos + rot * sin
    # One-time transpose here (amortized over all Q tiles): the score matmul
    # then needs no runtime transpose and its (TQ, S) output is lane-dense.
    kt_ref[0] = jnp.swapaxes(k3, 1, 2).astype(jnp.bfloat16)    # (heads, hd, S)
    v_ref[0] = v3.astype(jnp.bfloat16)                         # (heads, S, hd)


def build_kv_cache(x, cos_f, sin_f, wkv, anw, *, heads, eps):
    B, S, D = x.shape
    hd = D // heads
    kernel = functools.partial(kv_build_kernel, heads=heads, eps=eps)
    est = (4 * 2 * S * D            # x f32, double-buffered
           + 4 * S * 2 * D          # (S, 2D) f32 projection intermediate
           + 2 * 2 * D * D          # bf16 wkv
           + 2 * 2 * (2 * S * D))   # bf16 K^T + V outputs, double-buffered
    vmem = _vmem_limit_bytes(2 * est)

    def builder(single_buffer):
        c2 = lambda b: (0, 0)
        return pl.pallas_call(
            kernel,
            out_shape=(jax.ShapeDtypeStruct((B, heads, hd, S), jnp.bfloat16),
                       jax.ShapeDtypeStruct((B, heads, S, hd), jnp.bfloat16)),
            grid=(B,),
            in_specs=[
                pl.BlockSpec((1, S, D), lambda b: (b, 0, 0)),        # x rows
                _const_spec((S, hd), c2, single_buffer),             # cos
                _const_spec((S, hd), c2, single_buffer),             # sin
                _const_spec((D, 2 * D), c2, single_buffer),          # wkv
                _const_spec((1, D), c2, single_buffer),              # attn-norm w
            ],
            out_specs=(
                pl.BlockSpec((1, heads, hd, S), lambda b: (b, 0, 0, 0)),
                pl.BlockSpec((1, heads, S, hd), lambda b: (b, 0, 0, 0))),
            compiler_params=pltpu.CompilerParams(
                dimension_semantics=("parallel",),
                vmem_limit_bytes=vmem),
        )(x, cos_f, sin_f, wkv, anw)

    return _call_with_fallback(builder)


# ---------------------------------------------------------------------------
# Kernel 2: attention (against the bf16 KV cache) + SwiGLU FFN per Q tile.
# ---------------------------------------------------------------------------
def fused_block_kernel(
    xq_ref,    # (1, TQ, D) f32  residual + Q-source rows of this tile
    mask_ref,  # (1, 1, S)  f32  additive key bias (0 or -1e30)
    cosq_ref,  # (TQ, hd)   f32  Q-side cos table (softmax scale folded in)
    sinq_ref,  # (TQ, hd)   f32
    kt_ref,    # (1, heads, hd, S) bf16  pre-transposed RoPE'd K cache
    v_ref,     # (1, heads, S, hd) bf16  V cache
    wq_ref,    # (D, D)     bf16
    wo_ref,    # (D, D)     bf16
    w13_ref,   # (D, 2F)    bf16  fused w1|w3
    w2_ref,    # (F, D)     bf16
    anw_ref,   # (1, D)     f32
    fnw_ref,   # (1, D)     f32
    o_ref,     # (1, TQ, D) f32
    *,
    heads: int,
    eps: float,
):
    D = xq_ref.shape[-1]
    hd = D // heads
    half = hd // 2
    F = w13_ref.shape[-1] // 2

    def rmsnorm(h, w):                         # f32 in / f32 out
        var = jnp.mean(h * h, axis=-1, keepdims=True)
        return (h * jax.lax.rsqrt(var + eps)) * w

    # ---- attention: Q path --------------------------------------------------
    xq = xq_ref[0]                                             # (TQ, D) f32
    xqn = rmsnorm(xq, anw_ref[...]).astype(jnp.bfloat16)
    q = jnp.dot(xqn, wq_ref[...],
                preferred_element_type=jnp.float32)            # (TQ, D) f32
    q3 = jnp.stack([q[:, h * hd:(h + 1) * hd] for h in range(heads)], axis=0)
    rot = jnp.concatenate([-q3[..., half:], q3[..., :half]], axis=-1)
    # 1/sqrt(hd) is folded into cosq/sinq by the wrapper (exact, in f32).
    q3 = (q3 * cosq_ref[...][None]
          + rot * sinq_ref[...][None]).astype(jnp.bfloat16)    # (heads, TQ, hd)

    # ---- scores against the pre-transposed bf16 K cache ---------------------
    s = jnp.einsum('hqd,hdk->hqk', q3, kt_ref[0],
                   preferred_element_type=jnp.float32)         # (heads, TQ, S)
    s = s + mask_ref[0]                                        # (1, S) key bias
    s = s - jnp.max(s, axis=-1, keepdims=True)
    p = jnp.exp(s)
    p = p * pl.reciprocal(jnp.sum(p, axis=-1, keepdims=True))  # exact reciprocal

    ctx = jnp.einsum('hqk,hkd->hqd', p.astype(jnp.bfloat16), v_ref[0],
                     preferred_element_type=jnp.float32)       # (heads, TQ, hd)
    # Pack heads back onto the lane dim -> one K=D output-projection matmul.
    ctx2 = jnp.concatenate([ctx[h] for h in range(heads)],
                           axis=-1).astype(jnp.bfloat16)       # (TQ, D)
    attn = jnp.dot(ctx2, wo_ref[...],
                   preferred_element_type=jnp.float32)         # (TQ, D)

    h1 = xq + attn

    # ---- SwiGLU feed-forward (fused w1|w3 matmul) ----------------------------
    hn = rmsnorm(h1, fnw_ref[...]).astype(jnp.bfloat16)
    g = jnp.dot(hn, w13_ref[...], preferred_element_type=jnp.float32)  # (TQ, 2F)
    g1, g3 = g[:, :F], g[:, F:]
    act = ((g1 * jax.nn.sigmoid(g1)) * g3).astype(jnp.bfloat16)
    ffn = jnp.dot(act, w2_ref[...], preferred_element_type=jnp.float32)

    o_ref[0] = h1 + ffn


def transformer_block(x, mask_bias, cosq, sinq, cos_f, sin_f, kp,
                      *, heads, eps, tq):
    B, S, D = x.shape
    hd = D // heads
    F = kp["w2"].shape[0]
    assert S % tq == 0, "q tile must divide the sequence length"
    nq = S // tq

    # 1) bf16 KV cache (K pre-transposed), built once per layer per batch row.
    kt, v = build_kv_cache(x, cos_f, sin_f, kp["wkv"], kp["anw"],
                           heads=heads, eps=eps)

    kernel = functools.partial(fused_block_kernel, heads=heads, eps=eps)
    vmem = _vmem_limit_bytes(2 * _block_vmem_estimate(tq, S, D, heads, F))

    def builder(single_buffer):
        c2 = lambda b, q: (0, 0)
        return pl.pallas_call(
            kernel,
            out_shape=jax.ShapeDtypeStruct((B, S, D), jnp.float32),
            grid=(B, nq),
            in_specs=[
                pl.BlockSpec((1, tq, D), lambda b, q: (b, q, 0)),      # x Q rows
                pl.BlockSpec((1, 1, S), lambda b, q: (b, 0, 0)),       # key bias
                pl.BlockSpec((tq, hd), lambda b, q: (q, 0)),           # cos_q
                pl.BlockSpec((tq, hd), lambda b, q: (q, 0)),           # sin_q
                pl.BlockSpec((1, heads, hd, S),
                             lambda b, q: (b, 0, 0, 0)),               # K^T
                pl.BlockSpec((1, heads, S, hd),
                             lambda b, q: (b, 0, 0, 0)),               # V
                _const_spec((D, D), c2, single_buffer),                # wq
                _const_spec((D, D), c2, single_buffer),                # wo
                _const_spec((D, 2 * F), c2, single_buffer),            # w1|w3
                _const_spec((F, D), c2, single_buffer),                # w2
                _const_spec((1, D), c2, single_buffer),                # attn-norm
                _const_spec((1, D), c2, single_buffer),                # ffn-norm
            ],
            out_specs=pl.BlockSpec((1, tq, D), lambda b, q: (b, q, 0)),
            compiler_params=pltpu.CompilerParams(
                # No cross-Q-tile dependency any more -> both axes shardable
                # across TensorCores (v7x's second core gets work even at B=1).
                dimension_semantics=("parallel", "parallel"),
                vmem_limit_bytes=vmem),
        )(x, mask_bias, cosq, sinq, kt, v,
          kp["wq"], kp["wo"], kp["w13"], kp["w2"], kp["anw"], kp["fnw"])

    return _call_with_fallback(builder)


# ---------------------------------------------------------------------------
# Layer preparation / top-level forward
# ---------------------------------------------------------------------------
def _prepare_layer(lp, *, heads):
    """Cast / reshape a layer's f32 params into the kernel operand layout."""
    D = lp["wqkv_t"].shape[0]
    return dict(
        wq=lp["wqkv_t"][:, :D].astype(jnp.bfloat16),                  # (D, D)
        wkv=lp["wqkv_t"][:, D:].astype(jnp.bfloat16),                 # (D, 2D)
        wo=lp["wo_t"].astype(jnp.bfloat16),                           # (D, D)
        w13=jnp.concatenate([lp["w1_t"], lp["w3_t"]],
                            axis=1).astype(jnp.bfloat16),             # (D, 2F)
        w2=lp["w2_t"].astype(jnp.bfloat16),                           # (F, D)
        anw=lp["attn_norm_w"].reshape(1, D).astype(jnp.float32),
        fnw=lp["ffn_norm_w"].reshape(1, D).astype(jnp.float32),
    )


def _pick_q_tile(S, D, heads, F):
    """Largest Q tile whose rough working set fits a fraction of VMEM."""
    budget = 0.35 * _vmem_capacity_bytes()
    fallback = None
    for t in (512, 256, 128, 64, 32, 16, 8):
        if S % t:
            continue
        if fallback is None:
            fallback = t
        if _block_vmem_estimate(t, S, D, heads, F) <= budget:
            return t
    return fallback if fallback is not None else S


def transformer_layers_forward(x, layers, cos_f, sin_f, attention_mask=None,
                               *, heads, eps, q_tile=None):
    """Pallas implementation of TransformerLayers.forward (return_all_hiddens=False)."""
    B, S, D = x.shape
    hd = D // heads
    if attention_mask is None:
        mask_bias = jnp.zeros((B, 1, S), jnp.float32)
    else:
        # Finite large-negative bias (instead of -inf) so fully-masked rows
        # cannot produce inf - inf NaNs in the softmax.
        mask_bias = jnp.where(attention_mask.astype(bool), 0.0, -1e30)
        mask_bias = mask_bias.astype(jnp.float32).reshape(B, 1, S)

    # Softmax scale folded into the Q-side rotary tables (exact, in f32); the
    # K-side tables stay unscaled.  (Rotary covers the full head dim in gLM2.)
    scale = 1.0 / math.sqrt(hd)
    cos_q = (cos_f * scale).astype(jnp.float32)
    sin_q = (sin_f * scale).astype(jnp.float32)

    prepped = [_prepare_layer(lp, heads=heads) for lp in layers]
    F = prepped[0]["w2"].shape[0]
    tq = q_tile if q_tile is not None else _pick_q_tile(S, D, heads, F)

    # TODO(synk): cross-pallas_call prefetch of layer l+1 weights (P10) to hide
    #             weight HBM reads on v5e.
    # TODO(synk): optional bf16 residual stream between layers (v5e bandwidth).
    for kp in prepped:
        x = transformer_block(x, mask_bias, cos_q, sin_q, cos_f, sin_f, kp,
                              heads=heads, eps=eps, tq=tq)
    return x


# ---------------------------------------------------------------------------
# Deterministic parameter / rotary-cache construction (matches module shapes).
# ---------------------------------------------------------------------------
def make_params(key, *, depth, dim, heads, swiglu_multiple_of,
                ffn_dim_multiplier=None):
    hidden = 4 * dim
    hidden = int(2 * hidden / 3)
    if ffn_dim_multiplier is not None:
        hidden = int(ffn_dim_multiplier * hidden)
    hidden = swiglu_multiple_of * ((hidden + swiglu_multiple_of - 1)
                                   // swiglu_multiple_of)
    layers = []
    for _ in range(depth):
        key, k0, k1, k2, k3, k4, k5, k6 = jax.random.split(key, 8)
        layers.append(dict(
            # nn.Linear stores (out, in); kernel wants (in, out) -> transpose.
            wqkv_t=(0.02 * jax.random.normal(k0, (3 * dim, dim), jnp.float32)).T,
            wo_t=(0.02 * jax.random.normal(k1, (dim, dim), jnp.float32)).T,
            w1_t=(0.02 * jax.random.normal(k2, (hidden, dim), jnp.float32)).T,
            w2_t=(0.02 * jax.random.normal(k3, (dim, hidden), jnp.float32)).T,
            w3_t=(0.02 * jax.random.normal(k4, (hidden, dim), jnp.float32)).T,
            attn_norm_w=1.0 + 0.05 * jax.random.normal(k5, (dim,), jnp.float32),
            ffn_norm_w=1.0 + 0.05 * jax.random.normal(k6, (dim,), jnp.float32),
        ))
    return layers, hidden


def make_rotary_cache(seqlen, head_dim, base=10000.0):
    inv_freq = 1.0 / (base ** (jnp.arange(0, head_dim, 2, dtype=jnp.float32)
                               / head_dim))
    t = jnp.arange(seqlen, dtype=jnp.float32)
    freqs = jnp.outer(t, inv_freq)                       # (S, hd/2)
    cos, sin = jnp.cos(freqs), jnp.sin(freqs)
    # Full-width (S, hd) tables == repeat(cos, 'd -> (2 d)') of the reference.
    return (jnp.concatenate([cos, cos], axis=-1),
            jnp.concatenate([sin, sin], axis=-1))


# ---------------------------------------------------------------------------
# Pure-JAX f32 reference (mirrors the PyTorch forward) for correctness checks.
# ---------------------------------------------------------------------------
def _ref_rmsnorm(x, w, eps):
    var = jnp.mean(x * x, axis=-1, keepdims=True)
    return w * (x * jax.lax.rsqrt(var + eps))


def _ref_block(x, cos_f, sin_f, lp, heads, eps, mask_bias):
    B, S, D = x.shape
    hd = D // heads
    half = hd // 2
    xn = _ref_rmsnorm(x, lp["attn_norm_w"], eps)
    qkv = (xn @ lp["wqkv_t"]).reshape(B, S, 3, heads, hd)

    def rope(t):  # (B, S, heads, hd)
        rot = jnp.concatenate([-t[..., half:], t[..., :half]], axis=-1)
        return t * cos_f[None, :, None, :] + rot * sin_f[None, :, None, :]

    q = rope(qkv[:, :, 0]).transpose(0, 2, 1, 3)
    k = rope(qkv[:, :, 1]).transpose(0, 2, 1, 3)
    v = qkv[:, :, 2].transpose(0, 2, 1, 3)
    scores = jnp.einsum("bhsd,bhtd->bhst", q, k) / math.sqrt(hd)
    scores = scores + mask_bias[:, None, :, :]
    p = jax.nn.softmax(scores, axis=-1)
    out = jnp.einsum("bhst,bhtd->bhsd", p, v).transpose(0, 2, 1, 3).reshape(B, S, D)
    h = x + out @ lp["wo_t"]
    hn = _ref_rmsnorm(h, lp["ffn_norm_w"], eps)
    g1 = hn @ lp["w1_t"]
    g3 = hn @ lp["w3_t"]
    return h + ((g1 * jax.nn.sigmoid(g1)) * g3) @ lp["w2_t"]


def _ref_forward(x, layers, cos_f, sin_f, heads, eps, mask_bias):
    for lp in layers:
        x = _ref_block(x, cos_f, sin_f, lp, heads, eps, mask_bias)
    return x


# ---------------------------------------------------------------------------
if __name__ == "__main__":
    # gLM2-style config at small scale: dim=32, heads=4, depth=2, seq=16.
    B, S, D, H, DEPTH = 2, 16, 32, 4, 2
    EPS = 1e-6
    HD = D // H

    key = jax.random.PRNGKey(0)
    key, kx, kp = jax.random.split(key, 3)

    layers, hidden = make_params(kp, depth=DEPTH, dim=D, heads=H,
                                 swiglu_multiple_of=32, ffn_dim_multiplier=None)
    cos_f, sin_f = make_rotary_cache(S, HD)
    x = jax.random.normal(kx, (B, S, D), jnp.float32)

    # -- no attention mask ---------------------------------------------------
    out = transformer_layers_forward(x, layers, cos_f, sin_f,
                                     attention_mask=None,
                                     heads=H, eps=EPS, q_tile=8)
    out = jax.block_until_ready(out)
    ref = _ref_forward(x, layers, cos_f, sin_f, H, EPS,
                       jnp.zeros((B, 1, S), jnp.float32))
    assert out.shape == (B, S, D)
    err = float(jnp.max(jnp.abs(out - ref)))
    assert jnp.allclose(out, ref, rtol=2e-2, atol=2e-2), (
        f"mismatch vs. JAX reference (max abs err {err:.3e})")

    # -- key-padding mask (last 5 keys of batch 0 masked out) -----------------
    attn_mask = jnp.ones((B, S), jnp.int32).at[0, -5:].set(0)
    mask_bias = jnp.where(attn_mask.astype(bool), 0.0, -1e30)
    mask_bias = mask_bias.astype(jnp.float32).reshape(B, 1, S)
    out_m = transformer_layers_forward(x, layers, cos_f, sin_f,
                                       attention_mask=attn_mask,
                                       heads=H, eps=EPS, q_tile=8)
    out_m = jax.block_until_ready(out_m)
    ref_m = _ref_forward(x, layers, cos_f, sin_f, H, EPS, mask_bias)
    err_m = float(jnp.max(jnp.abs(out_m - ref_m)))
    assert jnp.allclose(out_m, ref_m, rtol=2e-2, atol=2e-2), (
        f"masked mismatch vs. JAX reference (max abs err {err_m:.3e})")

    print("KERNEL_OK")
</pallas_src>

<mosaic_0001>
module attributes {stable_mosaic.version = 11 : i64} {
  func.func @kv_build_kernel(%arg0: i32, %arg1: memref<1x16x32xf32, #tpu.memory_space<vmem>>, %arg2: memref<16x8xf32, #tpu.memory_space<vmem>>, %arg3: memref<16x8xf32, #tpu.memory_space<vmem>>, %arg4: memref<32x64xbf16, #tpu.memory_space<vmem>>, %arg5: memref<1x32xf32, #tpu.memory_space<vmem>>, %arg6: memref<1x4x8x16xbf16, #tpu.memory_space<vmem>>, %arg7: memref<1x4x16x8xbf16, #tpu.memory_space<vmem>>) attributes {dimension_semantics = [#tpu.dimension_semantics<parallel>], iteration_bounds = array<i64: 2>, scalar_prefetch = 0 : i64, scratch_operands = 0 : i64, tpu.core_type = #tpu.core_type<tc>, window_params = [{transform_indices = @transform_0, window_bounds = array<i64: 1, 16, 32>}, {pipeline_mode = #tpu.pipeline_mode<synchronous>, transform_indices = @transform_1, window_bounds = array<i64: 16, 8>}, {pipeline_mode = #tpu.pipeline_mode<synchronous>, transform_indices = @transform_2, window_bounds = array<i64: 16, 8>}, {pipeline_mode = #tpu.pipeline_mode<synchronous>, transform_indices = @transform_3, window_bounds = array<i64: 32, 64>}, {pipeline_mode = #tpu.pipeline_mode<synchronous>, transform_indices = @transform_4, window_bounds = array<i64: 1, 32>}, {transform_indices = @transform_5, window_bounds = array<i64: 1, 4, 8, 16>}, {transform_indices = @transform_6, window_bounds = array<i64: 1, 4, 16, 8>}]} {
    %c0 = arith.constant 0 : index
    %c0_0 = arith.constant 0 : index
    %c0_1 = arith.constant 0 : index
    %0 = vector.load %arg1[%c0, %c0_0, %c0_1] : memref<1x16x32xf32, #tpu.memory_space<vmem>>, vector<1x16x32xf32>
    %1 = vector.shape_cast %0 : vector<1x16x32xf32> to vector<16x32xf32>
    %2 = arith.mulf %1, %1 : vector<16x32xf32>
    %cst = arith.constant dense<0.000000e+00> : vector<16xf32>
    %3 = vector.multi_reduction <add>, %2, %cst [1] : vector<16x32xf32> to vector<16xf32>
    %4 = vector.shape_cast %3 : vector<16xf32> to vector<16x1xf32>
    %cst_2 = arith.constant 3.200000e+01 : f32
    %5 = vector.broadcast %cst_2 : f32 to vector<16x1xf32>
    %6 = arith.divf %4, %5 : vector<16x1xf32>
    %cst_3 = arith.constant 9.99999997E-7 : f32
    %7 = vector.broadcast %cst_3 : f32 to vector<16x1xf32>
    %8 = arith.addf %6, %7 : vector<16x1xf32>
    %9 = math.rsqrt %8 : vector<16x1xf32>
    %10 = vector.broadcast %9 : vector<16x1xf32> to vector<16x32xf32>
    %11 = arith.mulf %1, %10 : vector<16x32xf32>
    %c0_4 = arith.constant 0 : index
    %c0_5 = arith.constant 0 : index
    %12 = vector.load %arg5[%c0_4, %c0_5] : memref<1x32xf32, #tpu.memory_space<vmem>>, vector<1x32xf32>
    %13 = vector.broadcast %12 : vector<1x32xf32> to vector<16x32xf32>
    %14 = arith.mulf %11, %13 : vector<16x32xf32>
    %15 = arith.truncf %14 : vector<16x32xf32> to vector<16x32xbf16>
    %c0_6 = arith.constant 0 : index
    %c0_7 = arith.constant 0 : index
    %16 = vector.load %arg4[%c0_6, %c0_7] : memref<32x64xbf16, #tpu.memory_space<vmem>>, vector<32x64xbf16>
    %cst_8 = arith.constant dense<0.000000e+00> : vector<16x64xf32>
    %17 = tpu.matmul %15, %16, %cst_8 {dimension_numbers = #tpu.dot_dimension_numbers<[1], [0], [0], [1], [0, 0, 1, 1], [], []>} : vector<16x32xbf16>, vector<32x64xbf16>, vector<16x64xf32> -> vector<16x64xf32>
    %18 = vector.extract_strided_slice %17 {offsets = [0, 0], sizes = [16, 32], strides = [1, 1]} : vector<16x64xf32> to vector<16x32xf32>
    %19 = vector.extract_strided_slice %18 {offsets = [0, 0], sizes = [16, 8], strides = [1, 1]} : vector<16x32xf32> to vector<16x8xf32>
    %20 = vector.extract_strided_slice %18 {offsets = [0, 8], sizes = [16, 8], strides = [1, 1]} : vector<16x32xf32> to vector<16x8xf32>
    %21 = vector.extract_strided_slice %18 {offsets = [0, 16], sizes = [16, 8], strides = [1, 1]} : vector<16x32xf32> to vector<16x8xf32>
    %22 = vector.extract_strided_slice %18 {offsets = [0, 24], sizes = [16, 8], strides = [1, 1]} : vector<16x32xf32> to vector<16x8xf32>
    %23 = vector.shape_cast %19 : vector<16x8xf32> to vector<1x16x8xf32>
    %24 = vector.shape_cast %20 : vector<16x8xf32> to vector<1x16x8xf32>
    %25 = vector.shape_cast %21 : vector<16x8xf32> to vector<1x16x8xf32>
    %26 = vector.shape_cast %22 : vector<16x8xf32> to vector<1x16x8xf32>
    %27 = tpu.concatenate %23, %24, %25, %26 in 0 : vector<1x16x8xf32>, vector<1x16x8xf32>, vector<1x16x8xf32>, vector<1x16x8xf32> -> vector<4x16x8xf32>
    %28 = vector.extract_strided_slice %17 {offsets = [0, 32], sizes = [16, 32], strides = [1, 1]} : vector<16x64xf32> to vector<16x32xf32>
    %29 = vector.extract_strided_slice %28 {offsets = [0, 0], sizes = [16, 8], strides = [1, 1]} : vector<16x32xf32> to vector<16x8xf32>
    %30 = vector.extract_strided_slice %28 {offsets = [0, 8], sizes = [16, 8], strides = [1, 1]} : vector<16x32xf32> to vector<16x8xf32>
    %31 = vector.extract_strided_slice %28 {offsets = [0, 16], sizes = [16, 8], strides = [1, 1]} : vector<16x32xf32> to vector<16x8xf32>
    %32 = vector.extract_strided_slice %28 {offsets = [0, 24], sizes = [16, 8], strides = [1, 1]} : vector<16x32xf32> to vector<16x8xf32>
    %33 = vector.shape_cast %29 : vector<16x8xf32> to vector<1x16x8xf32>
    %34 = vector.shape_cast %30 : vector<16x8xf32> to vector<1x16x8xf32>
    %35 = vector.shape_cast %31 : vector<16x8xf32> to vector<1x16x8xf32>
    %36 = vector.shape_cast %32 : vector<16x8xf32> to vector<1x16x8xf32>
    %37 = tpu.concatenate %33, %34, %35, %36 in 0 : vector<1x16x8xf32>, vector<1x16x8xf32>, vector<1x16x8xf32>, vector<1x16x8xf32> -> vector<4x16x8xf32>
    %c0_9 = arith.constant 0 : index
    %c0_10 = arith.constant 0 : index
    %38 = vector.load %arg2[%c0_9, %c0_10] : memref<16x8xf32, #tpu.memory_space<vmem>>, vector<16x8xf32>
    %39 = vector.shape_cast %38 : vector<16x8xf32> to vector<1x16x8xf32>
    %c0_11 = arith.constant 0 : index
    %c0_12 = arith.constant 0 : index
    %40 = vector.load %arg3[%c0_11, %c0_12] : memref<16x8xf32, #tpu.memory_space<vmem>>, vector<16x8xf32>
    %41 = vector.shape_cast %40 : vector<16x8xf32> to vector<1x16x8xf32>
    %42 = vector.extract_strided_slice %27 {offsets = [0, 0, 4], sizes = [4, 16, 4], strides = [1, 1, 1]} : vector<4x16x8xf32> to vector<4x16x4xf32>
    %cst_13 = arith.constant 0.000000e+00 : f32
    %43 = vector.broadcast %cst_13 : f32 to vector<4x16x4xf32>
    %44 = arith.subf %43, %42 : vector<4x16x4xf32>
    %45 = vector.extract_strided_slice %27 {offsets = [0, 0, 0], sizes = [4, 16, 4], strides = [1, 1, 1]} : vector<4x16x8xf32> to vector<4x16x4xf32>
    %46 = tpu.concatenate %44, %45 in 2 : vector<4x16x4xf32>, vector<4x16x4xf32> -> vector<4x16x8xf32>
    %47 = vector.broadcast %39 : vector<1x16x8xf32> to vector<4x16x8xf32>
    %48 = arith.mulf %27, %47 : vector<4x16x8xf32>
    %49 = vector.broadcast %41 : vector<1x16x8xf32> to vector<4x16x8xf32>
    %50 = arith.mulf %46, %49 : vector<4x16x8xf32>
    %51 = arith.addf %48, %50 : vector<4x16x8xf32>
    %52 = tpu.transpose %51, [0, 2, 1] : vector<4x16x8xf32> -> vector<4x8x16xf32>
    %53 = arith.truncf %52 : vector<4x8x16xf32> to vector<4x8x16xbf16>
    %c0_14 = arith.constant 0 : index
    %c0_15 = arith.constant 0 : index
    %c0_16 = arith.constant 0 : index
    %c0_17 = arith.constant 0 : index
    %54 = vector.load %arg6[%c0_14, %c0_15, %c0_16, %c0_17] : memref<1x4x8x16xbf16, #tpu.memory_space<vmem>>, vector<1x4x8x16xbf16>
    %55 = vector.shape_cast %54 : vector<1x4x8x16xbf16> to vector<4x8x16xbf16>
    %56 = vector.shape_cast %53 : vector<4x8x16xbf16> to vector<1x4x8x16xbf16>
    tpu.vector_store %arg6[%c0_14, %c0_15, %c0_16, %c0_17], %56 {strides = array<i32>} : memref<1x4x8x16xbf16, #tpu.memory_space<vmem>>, vector<1x4x8x16xbf16>,
    %57 = arith.truncf %37 : vector<4x16x8xf32> to vector<4x16x8xbf16>
    %c0_18 = arith.constant 0 : index
    %c0_19 = arith.constant 0 : index
    %c0_20 = arith.constant 0 : index
    %c0_21 = arith.constant 0 : index
    %58 = vector.load %arg7[%c0_18, %c0_19, %c0_20, %c0_21] : memref<1x4x16x8xbf16, #tpu.memory_space<vmem>>, vector<1x4x16x8xbf16>
    %59 = vector.shape_cast %58 : vector<1x4x16x8xbf16> to vector<4x16x8xbf16>
    %60 = vector.shape_cast %57 : vector<4x16x8xbf16> to vector<1x4x16x8xbf16>
    tpu.vector_store %arg7[%c0_18, %c0_19, %c0_20, %c0_21], %60 {strides = array<i32>} : memref<1x4x16x8xbf16, #tpu.memory_space<vmem>>, vector<1x4x16x8xbf16>,
    return
  }
  func.func @transform_0(%arg0: i32) -> (i32, i32, i32) {
    %c0_i32 = arith.constant 0 : i32
    %c0_i32_0 = arith.constant 0 : i32
    %c0_i32_1 = arith.constant 0 : i32
    return %arg0, %c0_i32, %c0_i32_0 : i32, i32, i32
  }
  func.func @transform_1(%arg0: i32) -> (i32, i32) {
    %c0_i32 = arith.constant 0 : i32
    %c0_i32_0 = arith.constant 0 : i32
    %c0_i32_1 = arith.constant 0 : i32
    return %c0_i32, %c0_i32_0 : i32, i32
  }
  func.func @transform_2(%arg0: i32) -> (i32, i32) {
    %c0_i32 = arith.constant 0 : i32
    %c0_i32_0 = arith.constant 0 : i32
    %c0_i32_1 = arith.constant 0 : i32
    return %c0_i32, %c0_i32_0 : i32, i32
  }
  func.func @transform_3(%arg0: i32) -> (i32, i32) {
    %c0_i32 = arith.constant 0 : i32
    %c0_i32_0 = arith.constant 0 : i32
    %c0_i32_1 = arith.constant 0 : i32
    return %c0_i32, %c0_i32_0 : i32, i32
  }
  func.func @transform_4(%arg0: i32) -> (i32, i32) {
    %c0_i32 = arith.constant 0 : i32
    %c0_i32_0 = arith.constant 0 : i32
    %c0_i32_1 = arith.constant 0 : i32
    return %c0_i32, %c0_i32_0 : i32, i32
  }
  func.func @transform_5(%arg0: i32) -> (i32, i32, i32, i32) {
    %c0_i32 = arith.constant 0 : i32
    %c0_i32_0 = arith.constant 0 : i32
    %c0_i32_1 = arith.constant 0 : i32
    %c0_i32_2 = arith.constant 0 : i32
    return %arg0, %c0_i32, %c0_i32_0, %c0_i32_1 : i32, i32, i32, i32
  }
  func.func @transform_6(%arg0: i32) -> (i32, i32, i32, i32) {
    %c0_i32 = arith.constant 0 : i32
    %c0_i32_0 = arith.constant 0 : i32
    %c0_i32_1 = arith.constant 0 : i32
    %c0_i32_2 = arith.constant 0 : i32
    return %arg0, %c0_i32, %c0_i32_0, %c0_i32_1 : i32, i32, i32, i32
  }
}

module attributes {stable_mosaic.version = 11 : i64} {
  func.func @kv_build_kernel(%arg0: i32, %arg1: memref<1x16x32xf32, #tpu.memory_space<vmem>>, %arg2: memref<16x8xf32, #tpu.memory_space<vmem>>, %arg3: memref<16x8xf32, #tpu.memory_space<vmem>>, %arg4: memref<32x64xbf16, #tpu.memory_space<vmem>>, %arg5: memref<1x32xf32, #tpu.memory_space<vmem>>, %arg6: memref<1x4x8x16xbf16, #tpu.memory_space<vmem>>, %arg7: memref<1x4x16x8xbf16, #tpu.memory_space<vmem>>) attributes {dimension_semantics = [#tpu.dimension_semantics<parallel>], iteration_bounds = array<i64: 2>, scalar_prefetch = 0 : i64, scratch_operands = 0 : i64, tpu.core_type = #tpu.core_type<tc>, window_params = [{transform_indices = @transform_0, window_bounds = array<i64: 1, 16, 32>}, {pipeline_mode = #tpu.pipeline_mode<synchronous>, transform_indices = @transform_1, window_bounds = array<i64: 16, 8>}, {pipeline_mode = #tpu.pipeline_mode<synchronous>, transform_indices = @transform_2, window_bounds = array<i64: 16, 8>}, {pipeline_mode = #tpu.pipeline_mode<synchronous>, transform_indices = @transform_3, window_bounds = array<i64: 32, 64>}, {pipeline_mode = #tpu.pipeline_mode<synchronous>, transform_indices = @transform_4, window_bounds = array<i64: 1, 32>}, {transform_indices = @transform_5, window_bounds = array<i64: 1, 4, 8, 16>}, {transform_indices = @transform_6, window_bounds = array<i64: 1, 4, 16, 8>}]} {
    %c0 = arith.constant 0 : index
    %c0_0 = arith.constant 0 : index
    %c0_1 = arith.constant 0 : index
    %0 = vector.load %arg1[%c0, %c0_0, %c0_1] : memref<1x16x32xf32, #tpu.memory_space<vmem>>, vector<1x16x32xf32>
    %1 = vector.shape_cast %0 : vector<1x16x32xf32> to vector<16x32xf32>
    %2 = arith.mulf %1, %1 : vector<16x32xf32>
    %cst = arith.constant dense<0.000000e+00> : vector<16xf32>
    %3 = vector.multi_reduction <add>, %2, %cst [1] : vector<16x32xf32> to vector<16xf32>
    %4 = vector.shape_cast %3 : vector<16xf32> to vector<16x1xf32>
    %cst_2 = arith.constant 3.200000e+01 : f32
    %5 = vector.broadcast %cst_2 : f32 to vector<16x1xf32>
    %6 = arith.divf %4, %5 : vector<16x1xf32>
    %cst_3 = arith.constant 9.99999997E-7 : f32
    %7 = vector.broadcast %cst_3 : f32 to vector<16x1xf32>
    %8 = arith.addf %6, %7 : vector<16x1xf32>
    %9 = math.rsqrt %8 : vector<16x1xf32>
    %10 = vector.broadcast %9 : vector<16x1xf32> to vector<16x32xf32>
    %11 = arith.mulf %1, %10 : vector<16x32xf32>
    %c0_4 = arith.constant 0 : index
    %c0_5 = arith.constant 0 : index
    %12 = vector.load %arg5[%c0_4, %c0_5] : memref<1x32xf32, #tpu.memory_space<vmem>>, vector<1x32xf32>
    %13 = vector.broadcast %12 : vector<1x32xf32> to vector<16x32xf32>
    %14 = arith.mulf %11, %13 : vector<16x32xf32>
    %15 = arith.truncf %14 : vector<16x32xf32> to vector<16x32xbf16>
    %c0_6 = arith.constant 0 : index
    %c0_7 = arith.constant 0 : index
    %16 = vector.load %arg4[%c0_6, %c0_7] : memref<32x64xbf16, #tpu.memory_space<vmem>>, vector<32x64xbf16>
    %cst_8 = arith.constant dense<0.000000e+00> : vector<16x64xf32>
    %17 = tpu.matmul %15, %16, %cst_8 {dimension_numbers = #tpu.dot_dimension_numbers<[1], [0], [0], [1], [0, 0, 1, 1], [], []>} : vector<16x32xbf16>, vector<32x64xbf16>, vector<16x64xf32> -> vector<16x64xf32>
    %18 = vector.extract_strided_slice %17 {offsets = [0, 0], sizes = [16, 32], strides = [1, 1]} : vector<16x64xf32> to vector<16x32xf32>
    %19 = vector.extract_strided_slice %18 {offsets = [0, 0], sizes = [16, 8], strides = [1, 1]} : vector<16x32xf32> to vector<16x8xf32>
    %20 = vector.extract_strided_slice %18 {offsets = [0, 8], sizes = [16, 8], strides = [1, 1]} : vector<16x32xf32> to vector<16x8xf32>
    %21 = vector.extract_strided_slice %18 {offsets = [0, 16], sizes = [16, 8], strides = [1, 1]} : vector<16x32xf32> to vector<16x8xf32>
    %22 = vector.extract_strided_slice %18 {offsets = [0, 24], sizes = [16, 8], strides = [1, 1]} : vector<16x32xf32> to vector<16x8xf32>
    %23 = vector.shape_cast %19 : vector<16x8xf32> to vector<1x16x8xf32>
    %24 = vector.shape_cast %20 : vector<16x8xf32> to vector<1x16x8xf32>
    %25 = vector.shape_cast %21 : vector<16x8xf32> to vector<1x16x8xf32>
    %26 = vector.shape_cast %22 : vector<16x8xf32> to vector<1x16x8xf32>
    %27 = tpu.concatenate %23, %24, %25, %26 in 0 : vector<1x16x8xf32>, vector<1x16x8xf32>, vector<1x16x8xf32>, vector<1x16x8xf32> -> vector<4x16x8xf32>
    %28 = vector.extract_strided_slice %17 {offsets = [0, 32], sizes = [16, 32], strides = [1, 1]} : vector<16x64xf32> to vector<16x32xf32>
    %29 = vector.extract_strided_slice %28 {offsets = [0, 0], sizes = [16, 8], strides = [1, 1]} : vector<16x32xf32> to vector<16x8xf32>
    %30 = vector.extract_strided_slice %28 {offsets = [0, 8], sizes = [16, 8], strides = [1, 1]} : vector<16x32xf32> to vector<16x8xf32>
    %31 = vector.extract_strided_slice %28 {offsets = [0, 16], sizes = [16, 8], strides = [1, 1]} : vector<16x32xf32> to vector<16x8xf32>
    %32 = vector.extract_strided_slice %28 {offsets = [0, 24], sizes = [16, 8], strides = [1, 1]} : vector<16x32xf32> to vector<16x8xf32>
    %33 = vector.shape_cast %29 : vector<16x8xf32> to vector<1x16x8xf32>
    %34 = vector.shape_cast %30 : vector<16x8xf32> to vector<1x16x8xf32>
    %35 = vector.shape_cast %31 : vector<16x8xf32> to vector<1x16x8xf32>
    %36 = vector.shape_cast %32 : vector<16x8xf32> to vector<1x16x8xf32>
    %37 = tpu.concatenate %33, %34, %35, %36 in 0 : vector<1x16x8xf32>, vector<1x16x8xf32>, vector<1x16x8xf32>, vector<1x16x8xf32> -> vector<4x16x8xf32>
    %c0_9 = arith.constant 0 : index
    %c0_10 = arith.constant 0 : index
    %38 = vector.load %arg2[%c0_9, %c0_10] : memref<16x8xf32, #tpu.memory_space<vmem>>, vector<16x8xf32>
    %39 = vector.shape_cast %38 : vector<16x8xf32> to vector<1x16x8xf32>
    %c0_11 = arith.constant 0 : index
    %c0_12 = arith.constant 0 : index
    %40 = vector.load %arg3[%c0_11, %c0_12] : memref<16x8xf32, #tpu.memory_space<vmem>>, vector<16x8xf32>
    %41 = vector.shape_cast %40 : vector<16x8xf32> to vector<1x16x8xf32>
    %42 = vector.extract_strided_slice %27 {offsets = [0, 0, 4], sizes = [4, 16, 4], strides = [1, 1, 1]} : vector<4x16x8xf32> to vector<4x16x4xf32>
    %cst_13 = arith.constant 0.000000e+00 : f32
    %43 = vector.broadcast %cst_13 : f32 to vector<4x16x4xf32>
    %44 = arith.subf %43, %42 : vector<4x16x4xf32>
    %45 = vector.extract_strided_slice %27 {offsets = [0, 0, 0], sizes = [4, 16, 4], strides = [1, 1, 1]} : vector<4x16x8xf32> to vector<4x16x4xf32>
    %46 = tpu.concatenate %44, %45 in 2 : vector<4x16x4xf32>, vector<4x16x4xf32> -> vector<4x16x8xf32>
    %47 = vector.broadcast %39 : vector<1x16x8xf32> to vector<4x16x8xf32>
    %48 = arith.mulf %27, %47 : vector<4x16x8xf32>
    %49 = vector.broadcast %41 : vector<1x16x8xf32> to vector<4x16x8xf32>
    %50 = arith.mulf %46, %49 : vector<4x16x8xf32>
    %51 = arith.addf %48, %50 : vector<4x16x8xf32>
    %52 = tpu.transpose %51, [0, 2, 1] : vector<4x16x8xf32> -> vector<4x8x16xf32>
    %53 = arith.truncf %52 : vector<4x8x16xf32> to vector<4x8x16xbf16>
    %c0_14 = arith.constant 0 : index
    %c0_15 = arith.constant 0 : index
    %c0_16 = arith.constant 0 : index
    %c0_17 = arith.constant 0 : index
    %54 = vector.load %arg6[%c0_14, %c0_15, %c0_16, %c0_17] : memref<1x4x8x16xbf16, #tpu.memory_space<vmem>>, vector<1x4x8x16xbf16>
    %55 = vector.shape_cast %54 : vector<1x4x8x16xbf16> to vector<4x8x16xbf16>
    %56 = vector.shape_cast %53 : vector<4x8x16xbf16> to vector<1x4x8x16xbf16>
    tpu.vector_store %arg6[%c0_14, %c0_15, %c0_16, %c0_17], %56 {strides = array<i32>} : memref<1x4x8x16xbf16, #tpu.memory_space<vmem>>, vector<1x4x8x16xbf16>,
    %57 = arith.truncf %37 : vector<4x16x8xf32> to vector<4x16x8xbf16>
    %c0_18 = arith.constant 0 : index
    %c0_19 = arith.constant 0 : index
    %c0_20 = arith.constant 0 : index
    %c0_21 = arith.constant 0 : index
    %58 = vector.load %arg7[%c0_18, %c0_19, %c0_20, %c0_21] : memref<1x4x16x8xbf16, #tpu.memory_space<vmem>>, vector<1x4x16x8xbf16>
    %59 = vector.shape_cast %58 : vector<1x4x16x8xbf16> to vector<4x16x8xbf16>
    %60 = vector.shape_cast %57 : vector<4x16x8xbf16> to vector<1x4x16x8xbf16>
    tpu.vector_store %arg7[%c0_18, %c0_19, %c0_20, %c0_21], %60 {strides = array<i32>} : memref<1x4x16x8xbf16, #tpu.memory_space<vmem>>, vector<1x4x16x8xbf16>,
    return
  }
  func.func @transform_0(%arg0: i32) -> (i32, i32, i32) {
    %c0_i32 = arith.constant 0 : i32
    %c0_i32_0 = arith.constant 0 : i32
    %c0_i32_1 = arith.constant 0 : i32
    return %arg0, %c0_i32, %c0_i32_0 : i32, i32, i32
  }
  func.func @transform_1(%arg0: i32) -> (i32, i32) {
    %c0_i32 = arith.constant 0 : i32
    %c0_i32_0 = arith.constant 0 : i32
    %c0_i32_1 = arith.constant 0 : i32
    return %c0_i32, %c0_i32_0 : i32, i32
  }
  func.func @transform_2(%arg0: i32) -> (i32, i32) {
    %c0_i32 = arith.constant 0 : i32
    %c0_i32_0 = arith.constant 0 : i32
    %c0_i32_1 = arith.constant 0 : i32
    return %c0_i32, %c0_i32_0 : i32, i32
  }
  func.func @transform_3(%arg0: i32) -> (i32, i32) {
    %c0_i32 = arith.constant 0 : i32
    %c0_i32_0 = arith.constant 0 : i32
    %c0_i32_1 = arith.constant 0 : i32
    return %c0_i32, %c0_i32_0 : i32, i32
  }
  func.func @transform_4(%arg0: i32) -> (i32, i32) {
    %c0_i32 = arith.constant 0 : i32
    %c0_i32_0 = arith.constant 0 : i32
    %c0_i32_1 = arith.constant 0 : i32
    return %c0_i32, %c0_i32_0 : i32, i32
  }
  func.func @transform_5(%arg0: i32) -> (i32, i32, i32, i32) {
    %c0_i32 = arith.constant 0 : i32
    %c0_i32_0 = arith.constant 0 : i32
    %c0_i32_1 = arith.constant 0 : i32
    %c0_i32_2 = arith.constant 0 : i32
    return %arg0, %c0_i32, %c0_i32_0, %c0_i32_1 : i32, i32, i32, i32
  }
  func.func @transform_6(%arg0: i32) -> (i32, i32, i32, i32) {
    %c0_i32 = arith.constant 0 : i32
    %c0_i32_0 = arith.constant 0 : i32
    %c0_i32_1 = arith.constant 0 : i32
    %c0_i32_2 = arith.constant 0 : i32
    return %arg0, %c0_i32, %c0_i32_0, %c0_i32_1 : i32, i32, i32, i32
  }
}

</mosaic_0001>

<bundles_post_ra>
// kernel: tpu_custom_call.1
= control target key start
LH: loop header
LB: loop body
LE: loop exit
PB: predicated region body
PF: predicated region fallthrough
CT: control target
= control target key end

     0   :  { %12 = vsyncpa [#allocation3], 0  ;;  %s1222_s0 = inlined_call_operand.vmem [shape: f32[2,16,32], index: 0, kind: input, shape index: {}]   ;;  %s1223_s1 = inlined_call_operand.vmem [shape: f32[16,8], index: 1, kind: input, shape index: {}]   ;;  %s1224_s2 = inlined_call_operand.vmem [shape: f32[16,8], index: 2, kind: input, shape index: {}]   ;;  %s1225_s3 = inlined_call_operand.vmem [shape: bf16[32,64], index: 3, kind: input, shape index: {}]   ;;  %s1226_s4 = inlined_call_operand.vmem [shape: f32[1,32], index: 4, kind: input, shape index: {}]   ;;  %s1227_s5 = inlined_call_operand.hbm [shape: bf16[2,4,8,16], index: 5, kind: output, shape index: {0}]   ;;  %s1228_s6 = inlined_call_operand.vmem [shape: bf16[2,4,16,8], index: 6, kind: output, shape index: {1}]  }
   0x1   :  { %14 = vsyncpa [#allocation3 + $0x1], 0  ;;  %s1005_s21 = smov 0   ;;  %s1007_s22 = smov 0  }
   0x2   :  { %s1009_s23 = smov 0   ;;  %s1011_s24 = smov 0  }
   0x3 LB: > { %s1026_s25 = sadd.s32 4294967295, %s958_s24   ;;  %s778_s26 = sadd.s32 4294967294, %s958_s24   ;;  %s958_s24 = sphi %s1011_s24, %s1234_s24   ;;  %s954_s23 = sphi %s1009_s23, %s1233_s23   ;;  %s950_s22 = sphi %s1007_s22, %s1232_s22   ;;  %s946_s21 = sphi %s1005_s21, %s1231_s21  }
   0x4   : > { %s1030_s27 = sadd.s32 1, %s958_s24   ;;  %s137_s28 = sadd.s32 1, %s954_s23 }
   0x5   : > { %s134_s29 = ssub.s32 %s958_s24, %s1030_s27  ;;  %p147_p0 = scmp.ne.s32.totalorder %s954_s23, %s950_s22 }
   0x6   : > { %p135_p1 = scmp.eq.s32.totalorder %s134_s29, 0  ;;  %p148_p2 = scmp.eq.s32.totalorder %s1026_s25, 1 }
   0x7   : > { %p153_p3 = scmp.ne.s32.totalorder %s950_s22, %s946_s21  ;;  %p154_p4 = scmp.eq.s32.totalorder %s778_s26, 1 }
   0x8   : > { %s1041_s30 = scalar_select %p135_p1, %s954_s23, %s137_s28  }
   0x9   : > { %p1043_p5 = por %p148_p2, %p147_p0  ;;  %p1047_p6 = por %p154_p4, %p153_p3 }
   0xa   : > { %p781_p7 = scmp.ge.s32.totalorder %s958_s24, 1  ;;  %p218_p8 = scmp.lt.s32.totalorder %s958_s24, 3 }
   0xc   : > { %p219_p9 = pnand %p781_p7, %p218_p8 }
   0xd   : > { %p253_p10 = scmp.lt.s32.totalorder (!%p219_p9), %s1026_s25, 1  ;;  %s962_s20 = smov (!%p219_p9), 104  }
   0xe   : > { %222 = sbr.rel (%p219_p9) target bundleno = 786 (0x312), region = 40  ;;  %s963_s26 = smov (!%p219_p9), 120  }
   0xf   : > { %s964_s28 = smov (!%p219_p9), 112   ;;  %s965_s29 = smov (!%p219_p9), 124  }
  0x10   : > { %s967_s11 = smov (!%p219_p9), 96   ;;  %s968_s19 = smov (!%p219_p9), [#allocation2]  }
  0x13   : > { %s1055_s9 = scalar_select %p253_p10, %s1026_s25, 1  ;;  %vm268_vm0 = vcmask 261120   ;;  %v892_v6 = vld [vmem:[%s1225_s3 + $0x8] sm:$0xff]   ;;  %v960_v7 = vmov 0.0   ;;  %vm961_vm1 = vmmov 0   ;;  %v893_v8 = vld [vmem:[%s1225_s3] sm:$0xff]  }
  0x14   : > { %818 = vmatprep.subr.bf16.mxu0 %v960_v7  ;;  %822 = vmatprep.mubr.msk.bf16.mxu0 %vm961_vm1, %v960_v7  ;;  %v787_v18 = vld [vmem:[%s1226_s4] ss:$0 sm:$0xff]  ;;  %vm442_vm2 = vcmask 31744   ;;  %vm660_vm3 = vcmask 60416   ;;  %vm607_vm4 = vcmask 125952  }
  0x15   : > { %s804_s10 = sshll.u32 %s1055_s9, 4  ;;  %819 = vmatpush3.bf16.msra.mxu0 %v892_v6  ;;  %v376_v56 = vld [vmem:[%s1224_s2] sm:$0xff] }
  0x16   : > { %s257_s13 = scalar_lea.vmem %s1222_s0, %s804_s10  ;;  %820 = vmatprep.subr.bf16.mxu0 %v960_v7  ;;  %s966_s10 = smov 4   ;;  %v374_v58 = vld [vmem:[%s1223_s1] sm:$0xff] }
  0x17   : > { %v264_v0 = vld [vmem:[%s257_s13] sm:$0xff]  ;;  %v265_v1 = vld [vmem:[%s257_s13 + $0x8] sm:$0xff]  ;;  %s814_s13 = sshll.u32 %s1026_s25, 8 }
  0x18   : > { %v266_v2 = vmul.f32 %v264_v0, %v264_v0  ;;  %v267_v3 = vmul.f32 %v265_v1, %v265_v1  ;;  %s1175_s17 = scalar_lea.hbm %s1227_s5, %s814_s13 }
  0x19   : > { %821 = vmatpush3.bf16.msra.mxu0 %v893_v8  ;;  %v377_v8 = vld [vmem:[%s1224_s2 + $0x8] sm:$0xff] }
  0x1a   : > { %v269_v4 = vsel %vm268_vm0, %v266_v2, 0.0  ;;  %v272_v5 = vsel %vm268_vm0, %v267_v3, 0.0 }
  0x1b   : > { %270 = vadd.xlane.f32.xlu0 %v269_v4 }
  0x1f   : > { %273 = vadd.xlane.f32.xlu0 %v272_v5 }
  0xa4   : > { %v271_v9 = vpop.xlane.xlu0 %270 }
  0xa5   : > { %v276_v10 = vmul.f32 0.03125, %v271_v9 }
  0xa7   : > { %v278_v11 = vadd.f32 1e-06, %v276_v10 }
  0xa8   : > { %v274_v12 = vpop.xlane.xlu0 %273 }
  0xa9   : > { %894 = vrsqrt.f32 %v278_v11  ;;  %v277_v13 = vmul.f32 0.03125, %v274_v12 }
  0xab   : > { %v279_v14 = vadd.f32 1e-06, %v277_v13 }
  0xad   : > { %896 = vrsqrt.f32 %v279_v14 }
  0xb6   : > { %v895_v15 = vpop.eup %894 }
  0xb7   : > { %v282_v16 = vmul.f32 %v895_v15, %v264_v0  ;;  %v375_v15 = vld [vmem:[%s1223_s1 + $0x8] sm:$0xff] }
  0xb9   : > { %v291_v20 = vmul.f32 %v787_v18, %v282_v16 }
  0xba   : > { %v897_v17 = vpop.eup %896 }
  0xbb   : > { %v283_v19 = vmul.f32 %v897_v17, %v265_v1 }
  0xbd   : > { %v292_v21 = vmul.f32 %v787_v18, %v283_v19 }
  0xbf   : > { %v293_v22 = vpack.c.bf16 %v292_v21, %v291_v20 }
  0xc1   : > { %823 = vmatmul.mubr.msk.bf16.vlgmr.msra.gmra.mxu0 %vm268_vm0, %v293_v22 }
 0x181   : > { %v1073_v23 = vpop.f32.mrf.mxu0 }
 0x182   : > { %368 = vrot.lane.b32.xlu0 %v1073_v23, %s962_s20  ;;  %356 = vrot.lane.b32.xlu1 %v1073_v23, %s963_s26  ;;  %v378_v27 = vsub.f32 0.0, %v1073_v23  ;;  %v806_v41 = vpack.c.bf16 %v1073_v23, %v1073_v23  ;;  %v451_v1 = vmul.f32 %v374_v58, %v1073_v23 }
 0x183   : > { %v824_v24 = vpop.f32.mrf.mxu0 }
 0x185   : > { %v1077_v25 = vpop.f32.mrf.mxu0 }
 0x186   : > { %362 = vrot.lane.b32.xlu1 %v1073_v23, %s964_s28  ;;  %v379_v28 = vsub.f32 0.0, %v1077_v25  ;;  %v807_v42 = vpack.c.bf16 %v1077_v25, %v1077_v25 }
 0x187   : > { %v825_v26 = vpop.f32.mrf.mxu0 }
 0x18a   : > { %358 = vrot.lane.b32.xlu1 %v1077_v25, %s963_s26 }
 0x18e   : > { %364 = vrot.lane.b32.xlu1 %v1077_v25, %s964_s28 }
 0x192   : > { %370 = vrot.lane.b32.xlu1 %v1077_v25, %s962_s20  ;;  %s805_s20 = sshll.u32 %s1055_s9, 5  ;;  %s243_s9 = sand.u32 1, %s950_s22  }
 0x193   : > { %s1181_s25 = scalar_lea.sflag [#allocation3], %s243_s9 }
 0x196   : > { %394 = vrot.lane.b32.xlu1 %v378_v27, %s965_s29 }
 0x19a   : > { %418 = vrot.lane.b32.xlu1 %v1073_v23, %s966_s10  ;;  %v452_v23 = vmul.f32 %v375_v15, %v1077_v25 }
 0x19e   : > { %420 = vrot.lane.b32.xlu1 %v1077_v25, %s966_s10 }
 0x1a2   : > { %396 = vrot.lane.b32.xlu1 %v379_v28, %s965_s29 }
 0x1f4   : > { %v357_v29 = vpop.permute.xlu1 %356  ;;  %v1090_v30 = vpop.permute.xlu0 %368 }
 0x1f5   : > { %422 = vrot.lane.b32.xlu0 %v357_v29, %s966_s10  ;;  %v384_v32 = vsub.f32 0.0, %v1090_v30  ;;  %v380_v33 = vsub.f32 0.0, %v357_v29  ;;  %v808_v43 = vpack.c.bf16 %v357_v29, %v357_v29  ;;  %v812_v47 = vpack.c.bf16 %v1090_v30, %v1090_v30 }
 0x1f6   : > { %v453_v2 = vmul.f32 %v374_v58, %v357_v29  ;;  %v457_v14 = vmul.f32 %v374_v58, %v1090_v30 }
 0x1f8   : > { %v1092_v31 = vpop.permute.xlu1 %362 }
 0x1f9   : > { %430 = vrot.lane.b32.xlu0 %v1090_v30, %s966_s10  ;;  %426 = vrot.lane.b32.xlu1 %v1092_v31, %s966_s10  ;;  %v382_v35 = vsub.f32 0.0, %v1092_v31  ;;  %v810_v45 = vpack.c.bf16 %v1092_v31, %v1092_v31  ;;  %v455_v13 = vmul.f32 %v374_v58, %v1092_v31 }
 0x1fc   : > { %v1099_v34 = vpop.permute.xlu1 %358 }
 0x1fd   : > { %406 = vrot.lane.b32.xlu0 %v384_v32, %s965_s29  ;;  %398 = vrot.lane.b32.xlu1 %v380_v33, %s965_s29  ;;  %v381_v37 = vsub.f32 0.0, %v1099_v34  ;;  %v809_v44 = vpack.c.bf16 %v1099_v34, %v1099_v34  ;;  %v454_v22 = vmul.f32 %v375_v15, %v1099_v34 }
 0x200   : > { %v1102_v36 = vpop.permute.xlu1 %364 }
 0x201   : > { %424 = vrot.lane.b32.xlu0 %v1099_v34, %s966_s10  ;;  %402 = vrot.lane.b32.xlu1 %v382_v35, %s965_s29  ;;  %v383_v38 = vsub.f32 0.0, %v1102_v36  ;;  %v811_v46 = vpack.c.bf16 %v1102_v36, %v1102_v36  ;;  %v456_v25 = vmul.f32 %v375_v15, %v1102_v36 }
 0x204   : > { %v1108_v39 = vpop.permute.xlu1 %370 }
 0x205   : > { %400 = vrot.lane.b32.xlu0 %v381_v37, %s965_s29  ;;  %404 = vrot.lane.b32.xlu1 %v383_v38, %s965_s29  ;;  %v385_v40 = vsub.f32 0.0, %v1108_v39  ;;  %v813_v48 = vpack.c.bf16 %v1108_v39, %v1108_v39  ;;  %v458_v34 = vmul.f32 %v375_v15, %v1108_v39 }
 0x208   : > { %v395_v49 = vpop.permute.xlu1 %394 }
 0x209   : > { %432 = vrot.lane.b32.xlu0 %v1108_v39, %s966_s10  ;;  %428 = vrot.lane.b32.xlu1 %v1102_v36, %s966_s10 }
 0x20c   : > { %v419_v50 = vpop.permute.xlu1 %418 }
 0x20d   : > { %408 = vrot.lane.b32.xlu0 %v385_v40, %s965_s29  ;;  %v443_v57 = vsel %vm442_vm2, %v395_v49, %v419_v50  ;;  %s262_s29 = scalar_lea.vmem %s1228_s6, %s805_s20  ;;  %s902_s20 = sshll.u32 %s968_s19, 4  ;;  %s903_s20 = int_to_ptr.vmem [resolvable:$false] %s902_s20 }
 0x20e   : > { %v459_v59 = vmul.f32 %v443_v57, %v376_v56  ;;  %s904_s26 = scalar_lea.vmem %s903_s20, 512 }
 0x210   : > { %v421_v51 = vpop.permute.xlu1 %420  ;;  %v467_v6 = vadd.f32 %v459_v59, %v451_v1 }
 0x211   : > { %636 = vrot.lane.b32.xlu0 %v806_v41, %s967_s11 }
 0x214   : > { %v397_v52 = vpop.permute.xlu1 %396 }
 0x215   : > { %638 = vrot.lane.b32.xlu0 %v807_v42, %s967_s11  ;;  %v444_v9 = vsel %vm442_vm2, %v397_v52, %v421_v51 }
 0x216   : > { %v460_v16 = vmul.f32 %v444_v9, %v377_v8 }
 0x218   : > { %v468_v27 = vadd.f32 %v460_v16, %v452_v23 }
 0x219   : > { %640 = vrot.lane.b32.xlu0 %v808_v43, %s967_s11 }
 0x21d   : > { %642 = vrot.lane.b32.xlu0 %v809_v44, %s967_s11 }
 0x221   : > { %644 = vrot.lane.b32.xlu0 %v810_v45, %s967_s11 }
 0x225   : > { %646 = vrot.lane.b32.xlu0 %v811_v46, %s967_s11 }
 0x229   : > { %648 = vrot.lane.b32.xlu0 %v812_v47, %s967_s11 }
 0x22d   : > { %650 = vrot.lane.b32.xlu0 %v813_v48, %s967_s11  ;;  %s782_s11 = sshll.u32 %s243_s9, 4 }
 0x22e   : > { %s245_s12 = scalar_lea.vmem [#allocation2], %s782_s11 }
 0x22f   : > { %s688_s14 = sshll.u32 %s245_s12, 4  ;;  %s1177_s14 = int_to_ptr.vmem [resolvable:$true] %s688_s14 }
 0x230   : > { %s898_s18 = scalar_lea.vmem %s1177_s14, 256  ;;  %p905_p0 = scmp.lt.s32.totalorder %s1177_s14, %s903_s20 }
 0x231   : > { %p899_p11 = scmp.ne.s32.totalorder %s1177_s14, %s898_s18  ;;  %p906_p1 = scmp.lt.s32.totalorder %s904_s26, %s898_s18 }
 0x233   : > { %p900_p12 = pnand %p899_p11, %p1043_p5  ;;  %p907_p2 = por %p906_p1, %p905_p0 }
 0x235   : > { %p901_p13 = pneg %p900_p12 }
 0x237   : > { %p908_p3 = pnand %p907_p2, %p901_p13 }
 0x267   : > { %v423_v53 = vpop.permute.xlu0 %422 }
 0x26b   : > { %v431_v54 = vpop.permute.xlu0 %430  ;;  %v427_v55 = vpop.permute.xlu1 %426 }
 0x26f   : > { %v407_v60 = vpop.permute.xlu0 %406  ;;  %v399_v61 = vpop.permute.xlu1 %398 }
 0x270   : > { %v449_v62 = vsel %vm442_vm2, %v407_v60, %v431_v54  ;;  %v445_v63 = vsel %vm442_vm2, %v399_v61, %v423_v53 }
 0x271   : > { %v461_v0 = vmul.f32 %v445_v63, %v376_v56  ;;  %v465_v3 = vmul.f32 %v449_v62, %v376_v56 }
 0x273   : > { %v425_v4 = vpop.permute.xlu0 %424  ;;  %v403_v5 = vpop.permute.xlu1 %402  ;;  %v469_v7 = vadd.f32 %v461_v0, %v453_v2  ;;  %v473_v20 = vadd.f32 %v465_v3, %v457_v14 }
 0x274   : > { %v447_v10 = vsel %vm442_vm2, %v403_v5, %v427_v55 }
 0x275   : > { %v463_v11 = vmul.f32 %v447_v10, %v376_v56  ;;  %v874_v12 = vpack.i.bf16 %v469_v7, %v467_v6 }
 0x277   : > { %v401_v17 = vpop.permute.xlu0 %400  ;;  %875 = vxpose.xlu1.b32.start [1/2] (short) (narrow) %v874_v12, 8  ;;  %v405_v18 = vpop.permute.xlu1 %404  ;;  %v471_v19 = vadd.f32 %v463_v11, %v455_v13 }
 0x278   : > { %v446_v21 = vsel %vm442_vm2, %v401_v17, %v425_v4 }
 0x279   : > { %v462_v24 = vmul.f32 %v446_v21, %v377_v8  ;;  %v883_v26 = vpack.i.bf16 %v473_v20, %v471_v19 }
 0x27b   : > { %v470_v28 = vadd.f32 %v462_v24, %v454_v22  ;;  %v433_v29 = vpop.permute.xlu0 %432  ;;  %884 = vxpose.xlu0.b32.start [1/2] (short) (narrow) %v883_v26, 8  ;;  %v429_v30 = vpop.permute.xlu1 %428 }
 0x27c   : > { %v448_v31 = vsel %vm442_vm2, %v405_v18, %v429_v30 }
 0x27d   : > { %v876_v32 = vpack.i.bf16 %v470_v28, %v468_v27  ;;  %v464_v33 = vmul.f32 %v448_v31, %v377_v8 }
 0x27f   : > { %v409_v35 = vpop.permute.xlu0 %408  ;;  %877 = vxpose.xlu1.b32.end [2/2] (short) (narrow) %v876_v32, 8  ;;  %v472_v40 = vadd.f32 %v464_v33, %v456_v25 }
 0x280   : > { %v450_v37 = vsel %vm442_vm2, %v409_v35, %v433_v29 }
 0x281   : > { %v466_v38 = vmul.f32 %v450_v37, %v377_v8 }
 0x283   : > { %v474_v41 = vadd.f32 %v466_v38, %v458_v34  ;;  %v637_v42 = vpop.permute.xlu0 %636 }
 0x284   : > { %661 = vst.msk [vmem:[%s262_s29] sm:$0xf] %vm660_vm3, %v637_v42 }
 0x285   : > { %v885_v43 = vpack.i.bf16 %v474_v41, %v472_v40 }
 0x287   : > { %v639_v44 = vpop.permute.xlu0 %638  ;;  %886 = vxpose.xlu0.b32.end [2/2] (short) (narrow) %v885_v43, 8 }
 0x288   : > { %662 = vst.msk [vmem:[%s262_s29 + $0x4] sm:$0xf] %vm660_vm3, %v639_v44 }
 0x28b   : > { %v641_v45 = vpop.permute.xlu0 %640 }
 0x28c   : > { %663 = vst.msk [vmem:[%s262_s29 + $0x8] sm:$0xf] %vm660_vm3, %v641_v45 }
 0x28f   : > { %v643_v46 = vpop.permute.xlu0 %642 }
 0x290   : > { %664 = vst.msk [vmem:[%s262_s29 + $0xc] sm:$0xf] %vm660_vm3, %v643_v46 }
 0x293   : > { %v645_v36 = vpop.permute.xlu0 %644 }
 0x294   : > { %665 = vst.msk [vmem:[%s262_s29 + $0x10] sm:$0xf] %vm660_vm3, %v645_v36 }
 0x297   : > { %v647_v39 = vpop.permute.xlu0 %646 }
 0x298   : > { %666 = vst.msk [vmem:[%s262_s29 + $0x14] sm:$0xf] %vm660_vm3, %v647_v39 }
 0x29b   : > { %v649_v47 = vpop.permute.xlu0 %648 }
 0x29c   : > { %667 = vst.msk [vmem:[%s262_s29 + $0x18] sm:$0xf] %vm660_vm3, %v649_v47 }
 0x29f   : > { %v651_v48 = vpop.permute.xlu0 %650 }
 0x2a0   : > { %668 = vst.msk [vmem:[%s262_s29 + $0x1c] sm:$0xf] %vm660_vm3, %v651_v48 }
 0x2f7   : > { %v878_v49 = vpop.trf.xlu1 }
 0x2f8   : > { %v882_v50 = vunpack.i.h.bf16 %v878_v49  ;;  %v879_v51 = vunpack.i.l.bf16 %v878_v49 }
 0x2fa   : > { %v604_v52 = vpack.c.bf16 %v882_v50, %v882_v50  ;;  %v603_v53 = vpack.c.bf16 %v879_v51, %v879_v51 }
 0x2fc   : > { %608 = vst.msk [vmem:[%s245_s12] sm:$0xf] %vm607_vm4, %v603_v53  ;;  %609 = vst.msk [vmem:[%s245_s12 + $0x4] sm:$0xf] %vm607_vm4, %v604_v52 }
 0x2ff   : > { %v887_v54 = vpop.trf.xlu0 }
 0x300   : > { %v891_v55 = vunpack.i.h.bf16 %v887_v54  ;;  %v888_v56 = vunpack.i.l.bf16 %v887_v54 }
 0x302   : > { %v606_v57 = vpack.c.bf16 %v891_v55, %v891_v55  ;;  %v605_v58 = vpack.c.bf16 %v888_v56, %v888_v56 }
 0x304   : > { %610 = vst.msk [vmem:[%s245_s12 + $0x8] sm:$0xf] %vm607_vm4, %v605_v58  ;;  %611 = vst.msk [vmem:[%s245_s12 + $0xc] sm:$0xf] %vm607_vm4, %v606_v57 }
 0x305   : > { %911 = shalt.err (!%p908_p3)
}
 0x306   : > { %s912_s28 = scalar_lea.hbm %s1175_s17, 256  ;;  %s916_s11 = scalar_lea.hbm %s1227_s5, 512 }
 0x307   : > { %p913_p4 = scmp.ne.s32.totalorder %s1175_s17, %s912_s28  ;;  %p917_p9 = scmp.lt.s32.totalorder %s1175_s17, %s1227_s5 }
 0x308   : > { %p918_p10 = scmp.lt.s32.totalorder %s916_s11, %s912_s28 }
 0x309   : > { %p914_p7 = pnand %p913_p4, %p1043_p5 }
 0x30a   : > { %p919_p11 = por %p918_p10, %p917_p9 }
 0x30b   : > { %p915_p8 = pneg %p914_p7 }
 0x30d   : > { %p920_p12 = pnand %p919_p11, %p915_p8 }
 0x30f   : > { %923 = shalt.err (!%p920_p12)
}
 0x310   : > { %s969_s15 = smov 64  }
 0x311   : > { %826 = dma.vmem_to_hbm [thread:$0]  (%p1043_p5), %s1177_s14, 256, %s1175_s17, %s1181_s25, %s969_s15, %s969_s15, %s966_s10  }
 0x312 PF: > { %p832_p13 = scmp.ge.s32.totalorder %s958_s24, 2  ;;  %s706_s16 = sand.u32 1, %s946_s21  }
 0x313   : > { %s707_s18 = scalar_lea.sflag [#allocation3], %s706_s16 }
 0x314   : > { %p829_p0 = pnand %p832_p13, %p1047_p6 }
 0x316   : > { %p830_p1 = pneg %p829_p0 }
 0x318   : > { %941 = dma.done.wait (%p830_p1), %s707_s18, 256  }
 0x319   : > { %943 = vsyncadd (%p830_p1), %s707_s18, 4294967040  ;;  %p17_p2 = scmp.ge.s32.totalorder %s1030_s27, 4   ;;  %s1231_s21 = smov %s950_s22 }
 0x31a   : > { %s1232_s22 = smov %s954_s23  ;;  %s1233_s23 = smov %s1041_s30 }
 0x31b   : > { %s1234_s24 = smov %s1030_s27  ;;  %19 = sbr.rel (!%p17_p2) target bundleno = 3 (0x3), region = 87 }
 0x320   :  { %720 = vsyncpa [#allocation3], 1 }
 0x321   :  { %722 = vsyncpa [#allocation3 + $0x1], 1 }

// kernel: tpu_custom_call.1
= control target key start
LH: loop header
LB: loop body
LE: loop exit
PB: predicated region body
PF: predicated region fallthrough
CT: control target
= control target key end

     0   :  { %12 = vsyncpa [#allocation3], 0  ;;  %s1222_s0 = inlined_call_operand.vmem [shape: f32[2,16,32], index: 0, kind: input, shape index: {}]   ;;  %s1223_s1 = inlined_call_operand.vmem [shape: f32[16,8], index: 1, kind: input, shape index: {}]   ;;  %s1224_s2 = inlined_call_operand.vmem [shape: f32[16,8], index: 2, kind: input, shape index: {}]   ;;  %s1225_s3 = inlined_call_operand.vmem [shape: bf16[32,64], index: 3, kind: input, shape index: {}]   ;;  %s1226_s4 = inlined_call_operand.vmem [shape: f32[1,32], index: 4, kind: input, shape index: {}]   ;;  %s1227_s5 = inlined_call_operand.hbm [shape: bf16[2,4,8,16], index: 5, kind: output, shape index: {0}]   ;;  %s1228_s6 = inlined_call_operand.vmem [shape: bf16[2,4,16,8], index: 6, kind: output, shape index: {1}]  }
   0x1   :  { %14 = vsyncpa [#allocation3 + $0x1], 0  ;;  %s1005_s21 = smov 0   ;;  %s1007_s22 = smov 0  }
   0x2   :  { %s1009_s23 = smov 0   ;;  %s1011_s24 = smov 0  }
   0x3 LB: > { %s1026_s25 = sadd.s32 4294967295, %s958_s24   ;;  %s778_s26 = sadd.s32 4294967294, %s958_s24   ;;  %s958_s24 = sphi %s1011_s24, %s1234_s24   ;;  %s954_s23 = sphi %s1009_s23, %s1233_s23   ;;  %s950_s22 = sphi %s1007_s22, %s1232_s22   ;;  %s946_s21 = sphi %s1005_s21, %s1231_s21  }
   0x4   : > { %s1030_s27 = sadd.s32 1, %s958_s24   ;;  %s137_s28 = sadd.s32 1, %s954_s23 }
   0x5   : > { %s134_s29 = ssub.s32 %s958_s24, %s1030_s27  ;;  %p147_p0 = scmp.ne.s32.totalorder %s954_s23, %s950_s22 }
   0x6   : > { %p135_p1 = scmp.eq.s32.totalorder %s134_s29, 0  ;;  %p148_p2 = scmp.eq.s32.totalorder %s1026_s25, 1 }
   0x7   : > { %p153_p3 = scmp.ne.s32.totalorder %s950_s22, %s946_s21  ;;  %p154_p4 = scmp.eq.s32.totalorder %s778_s26, 1 }
   0x8   : > { %s1041_s30 = scalar_select %p135_p1, %s954_s23, %s137_s28  }
   0x9   : > { %p1043_p5 = por %p148_p2, %p147_p0  ;;  %p1047_p6 = por %p154_p4, %p153_p3 }
   0xa   : > { %p781_p7 = scmp.ge.s32.totalorder %s958_s24, 1  ;;  %p218_p8 = scmp.lt.s32.totalorder %s958_s24, 3 }
   0xc   : > { %p219_p9 = pnand %p781_p7, %p218_p8 }
   0xd   : > { %p253_p10 = scmp.lt.s32.totalorder (!%p219_p9), %s1026_s25, 1  ;;  %s962_s20 = smov (!%p219_p9), 104  }
   0xe   : > { %222 = sbr.rel (%p219_p9) target bundleno = 786 (0x312), region = 40  ;;  %s963_s26 = smov (!%p219_p9), 120  }
   0xf   : > { %s964_s28 = smov (!%p219_p9), 112   ;;  %s965_s29 = smov (!%p219_p9), 124  }
  0x10   : > { %s967_s11 = smov (!%p219_p9), 96   ;;  %s968_s19 = smov (!%p219_p9), [#allocation2]  }
  0x13   : > { %s1055_s9 = scalar_select %p253_p10, %s1026_s25, 1  ;;  %vm268_vm0 = vcmask 261120   ;;  %v892_v6 = vld [vmem:[%s1225_s3 + $0x8] sm:$0xff]   ;;  %v960_v7 = vmov 0.0   ;;  %vm961_vm1 = vmmov 0   ;;  %v893_v8 = vld [vmem:[%s1225_s3] sm:$0xff]  }
  0x14   : > { %818 = vmatprep.subr.bf16.mxu0 %v960_v7  ;;  %822 = vmatprep.mubr.msk.bf16.mxu0 %vm961_vm1, %v960_v7  ;;  %v787_v18 = vld [vmem:[%s1226_s4] ss:$0 sm:$0xff]  ;;  %vm442_vm2 = vcmask 31744   ;;  %vm660_vm3 = vcmask 60416   ;;  %vm607_vm4 = vcmask 125952  }
  0x15   : > { %s804_s10 = sshll.u32 %s1055_s9, 4  ;;  %819 = vmatpush3.bf16.msra.mxu0 %v892_v6  ;;  %v376_v56 = vld [vmem:[%s1224_s2] sm:$0xff] }
  0x16   : > { %s257_s13 = scalar_lea.vmem %s1222_s0, %s804_s10  ;;  %820 = vmatprep.subr.bf16.mxu0 %v960_v7  ;;  %s966_s10 = smov 4   ;;  %v374_v58 = vld [vmem:[%s1223_s1] sm:$0xff] }
  0x17   : > { %v264_v0 = vld [vmem:[%s257_s13] sm:$0xff]  ;;  %v265_v1 = vld [vmem:[%s257_s13 + $0x8] sm:$0xff]  ;;  %s814_s13 = sshll.u32 %s1026_s25, 8 }
  0x18   : > { %v266_v2 = vmul.f32 %v264_v0, %v264_v0  ;;  %v267_v3 = vmul.f32 %v265_v1, %v265_v1  ;;  %s1175_s17 = scalar_lea.hbm %s1227_s5, %s814_s13 }
  0x19   : > { %821 = vmatpush3.bf16.msra.mxu0 %v893_v8  ;;  %v377_v8 = vld [vmem:[%s1224_s2 + $0x8] sm:$0xff] }
  0x1a   : > { %v269_v4 = vsel %vm268_vm0, %v266_v2, 0.0  ;;  %v272_v5 = vsel %vm268_vm0, %v267_v3, 0.0 }
  0x1b   : > { %270 = vadd.xlane.f32.xlu0 %v269_v4 }
  0x1f   : > { %273 = vadd.xlane.f32.xlu0 %v272_v5 }
  0xa4   : > { %v271_v9 = vpop.xlane.xlu0 %270 }
  0xa5   : > { %v276_v10 = vmul.f32 0.03125, %v271_v9 }
  0xa7   : > { %v278_v11 = vadd.f32 1e-06, %v276_v10 }
  0xa8   : > { %v274_v12 = vpop.xlane.xlu0 %273 }
  0xa9   : > { %894 = vrsqrt.f32 %v278_v11  ;;  %v277_v13 = vmul.f32 0.03125, %v274_v12 }
  0xab   : > { %v279_v14 = vadd.f32 1e-06, %v277_v13 }
  0xad   : > { %896 = vrsqrt.f32 %v279_v14 }
  0xb6   : > { %v895_v15 = vpop.eup %894 }
  0xb7   : > { %v282_v16 = vmul.f32 %v895_v15, %v264_v0  ;;  %v375_v15 = vld [vmem:[%s1223_s1 + $0x8] sm:$0xff] }
  0xb9   : > { %v291_v20 = vmul.f32 %v787_v18, %v282_v16 }
  0xba   : > { %v897_v17 = vpop.eup %896 }
  0xbb   : > { %v283_v19 = vmul.f32 %v897_v17, %v265_v1 }
  0xbd   : > { %v292_v21 = vmul.f32 %v787_v18, %v283_v19 }
  0xbf   : > { %v293_v22 = vpack.c.bf16 %v292_v21, %v291_v20 }
  0xc1   : > { %823 = vmatmul.mubr.msk.bf16.vlgmr.msra.gmra.mxu0 %vm268_vm0, %v293_v22 }
 0x181   : > { %v1073_v23 = vpop.f32.mrf.mxu0 }
 0x182   : > { %368 = vrot.lane.b32.xlu0 %v1073_v23, %s962_s20  ;;  %356 = vrot.lane.b32.xlu1 %v1073_v23, %s963_s26  ;;  %v378_v27 = vsub.f32 0.0, %v1073_v23  ;;  %v806_v41 = vpack.c.bf16 %v1073_v23, %v1073_v23  ;;  %v451_v1 = vmul.f32 %v374_v58, %v1073_v23 }
 0x183   : > { %v824_v24 = vpop.f32.mrf.mxu0 }
 0x185   : > { %v1077_v25 = vpop.f32.mrf.mxu0 }
 0x186   : > { %362 = vrot.lane.b32.xlu1 %v1073_v23, %s964_s28  ;;  %v379_v28 = vsub.f32 0.0, %v1077_v25  ;;  %v807_v42 = vpack.c.bf16 %v1077_v25, %v1077_v25 }
 0x187   : > { %v825_v26 = vpop.f32.mrf.mxu0 }
 0x18a   : > { %358 = vrot.lane.b32.xlu1 %v1077_v25, %s963_s26 }
 0x18e   : > { %364 = vrot.lane.b32.xlu1 %v1077_v25, %s964_s28 }
 0x192   : > { %370 = vrot.lane.b32.xlu1 %v1077_v25, %s962_s20  ;;  %s805_s20 = sshll.u32 %s1055_s9, 5  ;;  %s243_s9 = sand.u32 1, %s950_s22  }
 0x193   : > { %s1181_s25 = scalar_lea.sflag [#allocation3], %s243_s9 }
 0x196   : > { %394 = vrot.lane.b32.xlu1 %v378_v27, %s965_s29 }
 0x19a   : > { %418 = vrot.lane.b32.xlu1 %v1073_v23, %s966_s10  ;;  %v452_v23 = vmul.f32 %v375_v15, %v1077_v25 }
 0x19e   : > { %420 = vrot.lane.b32.xlu1 %v1077_v25, %s966_s10 }
 0x1a2   : > { %396 = vrot.lane.b32.xlu1 %v379_v28, %s965_s29 }
 0x1f4   : > { %v357_v29 = vpop.permute.xlu1 %356  ;;  %v1090_v30 = vpop.permute.xlu0 %368 }
 0x1f5   : > { %422 = vrot.lane.b32.xlu0 %v357_v29, %s966_s10  ;;  %v384_v32 = vsub.f32 0.0, %v1090_v30  ;;  %v380_v33 = vsub.f32 0.0, %v357_v29  ;;  %v808_v43 = vpack.c.bf16 %v357_v29, %v357_v29  ;;  %v812_v47 = vpack.c.bf16 %v1090_v30, %v1090_v30 }
 0x1f6   : > { %v453_v2 = vmul.f32 %v374_v58, %v357_v29  ;;  %v457_v14 = vmul.f32 %v374_v58, %v1090_v30 }
 0x1f8   : > { %v1092_v31 = vpop.permute.xlu1 %362 }
 0x1f9   : > { %430 = vrot.lane.b32.xlu0 %v1090_v30, %s966_s10  ;;  %426 = vrot.lane.b32.xlu1 %v1092_v31, %s966_s10  ;;  %v382_v35 = vsub.f32 0.0, %v1092_v31  ;;  %v810_v45 = vpack.c.bf16 %v1092_v31, %v1092_v31  ;;  %v455_v13 = vmul.f32 %v374_v58, %v1092_v31 }
 0x1fc   : > { %v1099_v34 = vpop.permute.xlu1 %358 }
 0x1fd   : > { %406 = vrot.lane.b32.xlu0 %v384_v32, %s965_s29  ;;  %398 = vrot.lane.b32.xlu1 %v380_v33, %s965_s29  ;;  %v381_v37 = vsub.f32 0.0, %v1099_v34  ;;  %v809_v44 = vpack.c.bf16 %v1099_v34, %v1099_v34  ;;  %v454_v22 = vmul.f32 %v375_v15, %v1099_v34 }
 0x200   : > { %v1102_v36 = vpop.permute.xlu1 %364 }
 0x201   : > { %424 = vrot.lane.b32.xlu0 %v1099_v34, %s966_s10  ;;  %402 = vrot.lane.b32.xlu1 %v382_v35, %s965_s29  ;;  %v383_v38 = vsub.f32 0.0, %v1102_v36  ;;  %v811_v46 = vpack.c.bf16 %v1102_v36, %v1102_v36  ;;  %v456_v25 = vmul.f32 %v375_v15, %v1102_v36 }
 0x204   : > { %v1108_v39 = vpop.permute.xlu1 %370 }
 0x205   : > { %400 = vrot.lane.b32.xlu0 %v381_v37, %s965_s29  ;;  %404 = vrot.lane.b32.xlu1 %v383_v38, %s965_s29  ;;  %v385_v40 = vsub.f32 0.0, %v1108_v39  ;;  %v813_v48 = vpack.c.bf16 %v1108_v39, %v1108_v39  ;;  %v458_v34 = vmul.f32 %v375_v15, %v1108_v39 }
 0x208   : > { %v395_v49 = vpop.permute.xlu1 %394 }
 0x209   : > { %432 = vrot.lane.b32.xlu0 %v1108_v39, %s966_s10  ;;  %428 = vrot.lane.b32.xlu1 %v1102_v36, %s966_s10 }
 0x20c   : > { %v419_v50 = vpop.permute.xlu1 %418 }
 0x20d   : > { %408 = vrot.lane.b32.xlu0 %v385_v40, %s965_s29  ;;  %v443_v57 = vsel %vm442_vm2, %v395_v49, %v419_v50  ;;  %s262_s29 = scalar_lea.vmem %s1228_s6, %s805_s20  ;;  %s902_s20 = sshll.u32 %s968_s19, 4  ;;  %s903_s20 = int_to_ptr.vmem [resolvable:$false] %s902_s20 }
 0x20e   : > { %v459_v59 = vmul.f32 %v443_v57, %v376_v56  ;;  %s904_s26 = scalar_lea.vmem %s903_s20, 512 }
 0x210   : > { %v421_v51 = vpop.permute.xlu1 %420  ;;  %v467_v6 = vadd.f32 %v459_v59, %v451_v1 }
 0x211   : > { %636 = vrot.lane.b32.xlu0 %v806_v41, %s967_s11 }
 0x214   : > { %v397_v52 = vpop.permute.xlu1 %396 }
 0x215   : > { %638 = vrot.lane.b32.xlu0 %v807_v42, %s967_s11  ;;  %v444_v9 = vsel %vm442_vm2, %v397_v52, %v421_v51 }
 0x216   : > { %v460_v16 = vmul.f32 %v444_v9, %v377_v8 }
 0x218   : > { %v468_v27 = vadd.f32 %v460_v16, %v452_v23 }
 0x219   : > { %640 = vrot.lane.b32.xlu0 %v808_v43, %s967_s11 }
 0x21d   : > { %642 = vrot.lane.b32.xlu0 %v809_v44, %s967_s11 }
 0x221   : > { %644 = vrot.lane.b32.xlu0 %v810_v45, %s967_s11 }
 0x225   : > { %646 = vrot.lane.b32.xlu0 %v811_v46, %s967_s11 }
 0x229   : > { %648 = vrot.lane.b32.xlu0 %v812_v47, %s967_s11 }
 0x22d   : > { %650 = vrot.lane.b32.xlu0 %v813_v48, %s967_s11  ;;  %s782_s11 = sshll.u32 %s243_s9, 4 }
 0x22e   : > { %s245_s12 = scalar_lea.vmem [#allocation2], %s782_s11 }
 0x22f   : > { %s688_s14 = sshll.u32 %s245_s12, 4  ;;  %s1177_s14 = int_to_ptr.vmem [resolvable:$true] %s688_s14 }
 0x230   : > { %s898_s18 = scalar_lea.vmem %s1177_s14, 256  ;;  %p905_p0 = scmp.lt.s32.totalorder %s1177_s14, %s903_s20 }
 0x231   : > { %p899_p11 = scmp.ne.s32.totalorder %s1177_s14, %s898_s18  ;;  %p906_p1 = scmp.lt.s32.totalorder %s904_s26, %s898_s18 }
 0x233   : > { %p900_p12 = pnand %p899_p11, %p1043_p5  ;;  %p907_p2 = por %p906_p1, %p905_p0 }
 0x235   : > { %p901_p13 = pneg %p900_p12 }
 0x237   : > { %p908_p3 = pnand %p907_p2, %p901_p13 }
 0x267   : > { %v423_v53 = vpop.permute.xlu0 %422 }
 0x26b   : > { %v431_v54 = vpop.permute.xlu0 %430  ;;  %v427_v55 = vpop.permute.xlu1 %426 }
 0x26f   : > { %v407_v60 = vpop.permute.xlu0 %406  ;;  %v399_v61 = vpop.permute.xlu1 %398 }
 0x270   : > { %v449_v62 = vsel %vm442_vm2, %v407_v60, %v431_v54  ;;  %v445_v63 = vsel %vm442_vm2, %v399_v61, %v423_v53 }
 0x271   : > { %v461_v0 = vmul.f32 %v445_v63, %v376_v56  ;;  %v465_v3 = vmul.f32 %v449_v62, %v376_v56 }
 0x273   : > { %v425_v4 = vpop.permute.xlu0 %424  ;;  %v403_v5 = vpop.permute.xlu1 %402  ;;  %v469_v7 = vadd.f32 %v461_v0, %v453_v2  ;;  %v473_v20 = vadd.f32 %v465_v3, %v457_v14 }
 0x274   : > { %v447_v10 = vsel %vm442_vm2, %v403_v5, %v427_v55 }
 0x275   : > { %v463_v11 = vmul.f32 %v447_v10, %v376_v56  ;;  %v874_v12 = vpack.i.bf16 %v469_v7, %v467_v6 }
 0x277   : > { %v401_v17 = vpop.permute.xlu0 %400  ;;  %875 = vxpose.xlu1.b32.start [1/2] (short) (narrow) %v874_v12, 8  ;;  %v405_v18 = vpop.permute.xlu1 %404  ;;  %v471_v19 = vadd.f32 %v463_v11, %v455_v13 }
 0x278   : > { %v446_v21 = vsel %vm442_vm2, %v401_v17, %v425_v4 }
 0x279   : > { %v462_v24 = vmul.f32 %v446_v21, %v377_v8  ;;  %v883_v26 = vpack.i.bf16 %v473_v20, %v471_v19 }
 0x27b   : > { %v470_v28 = vadd.f32 %v462_v24, %v454_v22  ;;  %v433_v29 = vpop.permute.xlu0 %432  ;;  %884 = vxpose.xlu0.b32.start [1/2] (short) (narrow) %v883_v26, 8  ;;  %v429_v30 = vpop.permute.xlu1 %428 }
 0x27c   : > { %v448_v31 = vsel %vm442_vm2, %v405_v18, %v429_v30 }
 0x27d   : > { %v876_v32 = vpack.i.bf16 %v470_v28, %v468_v27  ;;  %v464_v33 = vmul.f32 %v448_v31, %v377_v8 }
 0x27f   : > { %v409_v35 = vpop.permute.xlu0 %408  ;;  %877 = vxpose.xlu1.b32.end [2/2] (short) (narrow) %v876_v32, 8  ;;  %v472_v40 = vadd.f32 %v464_v33, %v456_v25 }
 0x280   : > { %v450_v37 = vsel %vm442_vm2, %v409_v35, %v433_v29 }
 0x281   : > { %v466_v38 = vmul.f32 %v450_v37, %v377_v8 }
 0x283   : > { %v474_v41 = vadd.f32 %v466_v38, %v458_v34  ;;  %v637_v42 = vpop.permute.xlu0 %636 }
 0x284   : > { %661 = vst.msk [vmem:[%s262_s29] sm:$0xf] %vm660_vm3, %v637_v42 }
 0x285   : > { %v885_v43 = vpack.i.bf16 %v474_v41, %v472_v40 }
 0x287   : > { %v639_v44 = vpop.permute.xlu0 %638  ;;  %886 = vxpose.xlu0.b32.end [2/2] (short) (narrow) %v885_v43, 8 }
 0x288   : > { %662 = vst.msk [vmem:[%s262_s29 + $0x4] sm:$0xf] %vm660_vm3, %v639_v44 }
 0x28b   : > { %v641_v45 = vpop.permute.xlu0 %640 }
 0x28c   : > { %663 = vst.msk [vmem:[%s262_s29 + $0x8] sm:$0xf] %vm660_vm3, %v641_v45 }
 0x28f   : > { %v643_v46 = vpop.permute.xlu0 %642 }
 0x290   : > { %664 = vst.msk [vmem:[%s262_s29 + $0xc] sm:$0xf] %vm660_vm3, %v643_v46 }
 0x293   : > { %v645_v36 = vpop.permute.xlu0 %644 }
 0x294   : > { %665 = vst.msk [vmem:[%s262_s29 + $0x10] sm:$0xf] %vm660_vm3, %v645_v36 }
 0x297   : > { %v647_v39 = vpop.permute.xlu0 %646 }
 0x298   : > { %666 = vst.msk [vmem:[%s262_s29 + $0x14] sm:$0xf] %vm660_vm3, %v647_v39 }
 0x29b   : > { %v649_v47 = vpop.permute.xlu0 %648 }
 0x29c   : > { %667 = vst.msk [vmem:[%s262_s29 + $0x18] sm:$0xf] %vm660_vm3, %v649_v47 }
 0x29f   : > { %v651_v48 = vpop.permute.xlu0 %650 }
 0x2a0   : > { %668 = vst.msk [vmem:[%s262_s29 + $0x1c] sm:$0xf] %vm660_vm3, %v651_v48 }
 0x2f7   : > { %v878_v49 = vpop.trf.xlu1 }
 0x2f8   : > { %v882_v50 = vunpack.i.h.bf16 %v878_v49  ;;  %v879_v51 = vunpack.i.l.bf16 %v878_v49 }
 0x2fa   : > { %v604_v52 = vpack.c.bf16 %v882_v50, %v882_v50  ;;  %v603_v53 = vpack.c.bf16 %v879_v51, %v879_v51 }
 0x2fc   : > { %608 = vst.msk [vmem:[%s245_s12] sm:$0xf] %vm607_vm4, %v603_v53  ;;  %609 = vst.msk [vmem:[%s245_s12 + $0x4] sm:$0xf] %vm607_vm4, %v604_v52 }
 0x2ff   : > { %v887_v54 = vpop.trf.xlu0 }
 0x300   : > { %v891_v55 = vunpack.i.h.bf16 %v887_v54  ;;  %v888_v56 = vunpack.i.l.bf16 %v887_v54 }
 0x302   : > { %v606_v57 = vpack.c.bf16 %v891_v55, %v891_v55  ;;  %v605_v58 = vpack.c.bf16 %v888_v56, %v888_v56 }
 0x304   : > { %610 = vst.msk [vmem:[%s245_s12 + $0x8] sm:$0xf] %vm607_vm4, %v605_v58  ;;  %611 = vst.msk [vmem:[%s245_s12 + $0xc] sm:$0xf] %vm607_vm4, %v606_v57 }
 0x305   : > { %911 = shalt.err (!%p908_p3)
}
 0x306   : > { %s912_s28 = scalar_lea.hbm %s1175_s17, 256  ;;  %s916_s11 = scalar_lea.hbm %s1227_s5, 512 }
 0x307   : > { %p913_p4 = scmp.ne.s32.totalorder %s1175_s17, %s912_s28  ;;  %p917_p9 = scmp.lt.s32.totalorder %s1175_s17, %s1227_s5 }
 0x308   : > { %p918_p10 = scmp.lt.s32.totalorder %s916_s11, %s912_s28 }
 0x309   : > { %p914_p7 = pnand %p913_p4, %p1043_p5 }
 0x30a   : > { %p919_p11 = por %p918_p10, %p917_p9 }
 0x30b   : > { %p915_p8 = pneg %p914_p7 }
 0x30d   : > { %p920_p12 = pnand %p919_p11, %p915_p8 }
 0x30f   : > { %923 = shalt.err (!%p920_p12)
}
 0x310   : > { %s969_s15 = smov 64  }
 0x311   : > { %826 = dma.vmem_to_hbm [thread:$0]  (%p1043_p5), %s1177_s14, 256, %s1175_s17, %s1181_s25, %s969_s15, %s969_s15, %s966_s10  }
 0x312 PF: > { %p832_p13 = scmp.ge.s32.totalorder %s958_s24, 2  ;;  %s706_s16 = sand.u32 1, %s946_s21  }
 0x313   : > { %s707_s18 = scalar_lea.sflag [#allocation3], %s706_s16 }
 0x314   : > { %p829_p0 = pnand %p832_p13, %p1047_p6 }
 0x316   : > { %p830_p1 = pneg %p829_p0 }
 0x318   : > { %941 = dma.done.wait (%p830_p1), %s707_s18, 256  }
 0x319   : > { %943 = vsyncadd (%p830_p1), %s707_s18, 4294967040  ;;  %p17_p2 = scmp.ge.s32.totalorder %s1030_s27, 4   ;;  %s1231_s21 = smov %s950_s22 }
 0x31a   : > { %s1232_s22 = smov %s954_s23  ;;  %s1233_s23 = smov %s1041_s30 }
 0x31b   : > { %s1234_s24 = smov %s1030_s27  ;;  %19 = sbr.rel (!%p17_p2) target bundleno = 3 (0x3), region = 87 }
 0x320   :  { %720 = vsyncpa [#allocation3], 1 }
 0x321   :  { %722 = vsyncpa [#allocation3 + $0x1], 1 }

</bundles_post_ra>
